<compile_context>
chip_gen: v6e
topology: v6e:2x2x1
jax: 0.10.0
libtpu: 0.0.40
codegen_flags: <defaults>
</compile_context>

<pallas_src>
import jax
import jax.numpy as jnp
from jax.experimental import pallas as pl
from jax.experimental.pallas import tpu as pltpu


_X_TILE_BYTES = 2 << 20  # ~2 MiB of x per grid step (double-buffered ~4 MiB)


def _round_up(n, m):
    return ((n + m - 1) // m) * m


def _cores_per_chip():
    """Pallas-visible TensorCores per chip (v7x megacore = 2; v5e/v6e = 1)."""
    try:
        kind = (jax.devices()[0].device_kind or "").lower()
    except Exception:
        return 1
    return 2 if "7" in kind else 1


def _choose_batch_tile(batch, feat, itemsize, n_cores):
    """Rows of x per grid step."""
    # Biggest lane-aligned tile holding ~2 MiB of x; per-grid-step overhead
    # (~0.35 us) then stays tiny relative to the tile's DMA time.
    rows_cap = max(128, ((_X_TILE_BYTES // max(1, feat * itemsize)) // 128) * 128)
    if batch <= 128 or n_cores <= 1:
        # Single-TC chips (v5e/v6e): one block when the whole batch fits the
        # cap -> no per-step pipeline overhead at all.
        return batch if batch <= rows_cap else rows_cap
    # Multi-TC (v7x): keep grid >= n_cores so the "parallel" batch axis shards
    # across both cores' independent HBM paths; tiles stay multiples of 128.
    per_core = max(128, _round_up((batch + n_cores - 1) // n_cores, 128))
    return min(rows_cap, per_core)


def adversarial_kernel(x_ref, w1_ref, b1_ref, w3_ref, b3_ref, o_ref):
    # ---- Layer 1 (MXU): contract the feature dim of W1 (Hp, F) and x (TB, F)
    # -> hidden-major (Hp, TB) tile, f32 accumulate. Batch lands on lanes so
    # every vreg is lane-dense even for Hp = 32.
    h = jax.lax.dot_general(
        w1_ref[...], x_ref[...],
        dimension_numbers=(((1,), (1,)), ((), ())),
        preferred_element_type=jnp.float32,
    )                                                    # (Hp, TB) f32
    # Bias + ReLU on the VPU; b1 is (Hp, 1) and broadcasts along lanes.
    h = jnp.maximum(h + b1_ref[...], 0.0)

    # ---- Layer 3 (single output unit): VPU multiply + sublane reduction
    # instead of an N=1 MXU matmul; result is a lane-dense (1, TB) row.
    y = jnp.sum(h * w3_ref[...], axis=0, keepdims=True) + b3_ref[0]

    # ---- Sigmoid: EUP exp + exact divide (approx reciprocal caused the
    # earlier numeric mismatch; the divide cost here is negligible).
    o_ref[...] = 1.0 / (1.0 + jnp.exp(-y))


def prepare_adversarial_params(w1, b1, w3, b3, compute_dtype=jnp.float32):
    """One-time parameter prep (hoisted out of the per-call hot path).

    torch nn.Linear layout:
      w1: (H, F) ad_layer1.weight   b1: (H,) ad_layer1.bias
      w3: (1, H) ad_layer3.weight   b3: (1,) ad_layer3.bias
    Pads the hidden dim to a sublane multiple (padded rows are zero so they
    contribute nothing) and casts W1 to the MXU input dtype.
    """
    H, F = w1.shape
    Hp = _round_up(max(H, 8), 8)
    w1_p = jnp.zeros((Hp, F), jnp.float32).at[:H, :].set(
        jnp.asarray(w1, jnp.float32))
    w1_p = w1_p.astype(compute_dtype)
    b1_p = jnp.zeros((Hp, 1), jnp.float32).at[:H, 0].set(
        jnp.asarray(b1, jnp.float32).reshape(H))
    w3_p = jnp.zeros((Hp, 1), jnp.float32).at[:H, 0].set(
        jnp.asarray(w3, jnp.float32).reshape(H))
    b3_p = jnp.asarray(b3, jnp.float32).reshape(1)
    return w1_p, b1_p, w3_p, b3_p


def adversarial_forward(x, params):
    """Forward pass of AdversarialNetwork (eval mode): (B, F) -> (B, 1).

    x is streamed in whatever dtype it arrives in (bf16 activations halve the
    HBM traffic on all generations; accumulation / epilogue stay f32).
    """
    w1_p, b1_p, w3_p, b3_p = params
    B, F = x.shape
    Hp = w1_p.shape[0]
    if w1_p.dtype != x.dtype:
        w1_p = w1_p.astype(x.dtype)   # tiny, VMEM-resident; match MXU dtype

    itemsize = jnp.dtype(x.dtype).itemsize
    TB = _choose_batch_tile(B, F, itemsize, _cores_per_chip())
    grid = (pl.cdiv(B, TB),)  # ragged last tile: OOB lanes are lane-isolated
                              # and never read back (sliced off by out shape)

    cost = pl.CostEstimate(
        flops=2 * B * F * Hp + 4 * B * Hp + 4 * B,
        transcendentals=B,
        bytes_accessed=(B * F * itemsize + B * 4
                        + w1_p.size * jnp.dtype(w1_p.dtype).itemsize
                        + (b1_p.size + w3_p.size + b3_p.size) * 4),
    )

    out_row = pl.pallas_call(
        adversarial_kernel,
        out_shape=jax.ShapeDtypeStruct((1, B), jnp.float32),
        grid=grid,
        in_specs=[
            pl.BlockSpec((TB, F), lambda i: (i, 0)),            # x tile (pipelined)
            pl.BlockSpec((Hp, F), lambda i: (0, 0)),            # W1, VMEM-resident
            pl.BlockSpec((Hp, 1), lambda i: (0, 0)),            # b1, VMEM-resident
            pl.BlockSpec((Hp, 1), lambda i: (0, 0)),            # w3, VMEM-resident
            pl.BlockSpec(memory_space=pltpu.MemorySpace.SMEM),  # b3 scalar
        ],
        out_specs=pl.BlockSpec((1, TB), lambda i: (0, i)),      # lane-dense output
        compiler_params=pltpu.CompilerParams(
            dimension_semantics=("parallel",),  # megacore-shardable on v7x
        ),
        cost_estimate=cost,
    )(x, w1_p, b1_p, w3_p, b3_p)

    return out_row.reshape(B, 1)


def reference(x, w1, b1, w3, b3):
    h = jnp.maximum(jnp.dot(x, w1.T) + b1, 0.0)
    return jax.nn.sigmoid(jnp.dot(h, w3.T) + b3)


if __name__ == "__main__":
    # Small shapes consistent with the module: in_feature=64, hidden_size=32,
    # batch=512.
    B, IN_FEATURE, HIDDEN = 512, 64, 32

    key = jax.random.PRNGKey(0)
    kx, k1, k2, k3, k4 = jax.random.split(key, 5)

    x = jax.random.normal(kx, (B, IN_FEATURE), dtype=jnp.float32)

    # torch nn.Linear layout: weight [out, in], bias [out].
    w1 = jax.random.normal(k1, (HIDDEN, IN_FEATURE), dtype=jnp.float32) * 0.05
    b1 = jax.random.normal(k2, (HIDDEN,), dtype=jnp.float32) * 0.05
    w3 = jax.random.normal(k3, (1, HIDDEN), dtype=jnp.float32) * 0.05
    b3 = jax.random.normal(k4, (1,), dtype=jnp.float32) * 0.05

    y_ref = reference(x, w1, b1, w3, b3)

    # f32 activations (exact sigmoid epilogue).
    params_f32 = prepare_adversarial_params(w1, b1, w3, b3,
                                            compute_dtype=jnp.float32)
    y = jax.block_until_ready(adversarial_forward(x, params_f32))
    assert y.shape == (B, 1)
    assert bool(jnp.allclose(y, y_ref, atol=5e-3, rtol=5e-3)), \
        "f32 mismatch vs reference"

    # bf16 activations straight from a (simulated) bf16 producer: halves the x
    # HBM traffic on all generations; the MXU takes bf16 operands and the
    # accumulation / epilogue stay f32.
    x_bf16 = x.astype(jnp.bfloat16)
    params_bf16 = prepare_adversarial_params(w1, b1, w3, b3,
                                             compute_dtype=jnp.bfloat16)
    y_bf16 = jax.block_until_ready(adversarial_forward(x_bf16, params_bf16))
    assert y_bf16.shape == (B, 1)
    assert bool(jnp.allclose(y_bf16, y_ref, atol=3e-2, rtol=3e-2)), \
        "bf16 mismatch vs reference"

    print("KERNEL_OK")
</pallas_src>

<mosaic_0001>
module attributes {stable_mosaic.version = 11 : i64} {
  func.func @adversarial_kernel(%arg0: i32, %arg1: memref<512x64xf32, #tpu.memory_space<vmem>>, %arg2: memref<32x64xf32, #tpu.memory_space<vmem>>, %arg3: memref<32x1xf32, #tpu.memory_space<vmem>>, %arg4: memref<32x1xf32, #tpu.memory_space<vmem>>, %arg5: memref<1xf32, #tpu.memory_space<smem>>, %arg6: memref<1x512xf32, #tpu.memory_space<vmem>>) attributes {dimension_semantics = [#tpu.dimension_semantics<parallel>], iteration_bounds = array<i64: 1>, scalar_prefetch = 0 : i64, scratch_operands = 0 : i64, tpu.core_type = #tpu.core_type<tc>, window_params = [{transform_indices = @transform_0, window_bounds = array<i64: 512, 64>}, {pipeline_mode = #tpu.pipeline_mode<synchronous>, transform_indices = @transform_1, window_bounds = array<i64: 32, 64>}, {pipeline_mode = #tpu.pipeline_mode<synchronous>, transform_indices = @transform_2, window_bounds = array<i64: 32, 1>}, {pipeline_mode = #tpu.pipeline_mode<synchronous>, transform_indices = @transform_3, window_bounds = array<i64: 32, 1>}, {transform_indices = @transform_4, window_bounds = array<i64: 1>}, {transform_indices = @transform_5, window_bounds = array<i64: 1, 512>}]} {
    %c0 = arith.constant 0 : index
    %c0_0 = arith.constant 0 : index
    %0 = vector.load %arg2[%c0, %c0_0] : memref<32x64xf32, #tpu.memory_space<vmem>>, vector<32x64xf32>
    %c0_1 = arith.constant 0 : index
    %c0_2 = arith.constant 0 : index
    %1 = vector.load %arg1[%c0_1, %c0_2] : memref<512x64xf32, #tpu.memory_space<vmem>>, vector<512x64xf32>
    %cst = arith.constant dense<0.000000e+00> : vector<32x512xf32>
    %2 = tpu.matmul %0, %1, %cst {dimension_numbers = #tpu.dot_dimension_numbers<[1], [1], [0], [0], [0, 0, 1, 0], [], []>} : vector<32x64xf32>, vector<512x64xf32>, vector<32x512xf32> -> vector<32x512xf32>
    %c0_3 = arith.constant 0 : index
    %c0_4 = arith.constant 0 : index
    %3 = vector.load %arg3[%c0_3, %c0_4] : memref<32x1xf32, #tpu.memory_space<vmem>>, vector<32x1xf32>
    %4 = vector.broadcast %3 : vector<32x1xf32> to vector<32x512xf32>
    %5 = arith.addf %2, %4 : vector<32x512xf32>
    %cst_5 = arith.constant 0.000000e+00 : f32
    %6 = vector.broadcast %cst_5 : f32 to vector<32x512xf32>
    %7 = arith.maximumf %5, %6 : vector<32x512xf32>
    %c0_6 = arith.constant 0 : index
    %c0_7 = arith.constant 0 : index
    %8 = vector.load %arg4[%c0_6, %c0_7] : memref<32x1xf32, #tpu.memory_space<vmem>>, vector<32x1xf32>
    %9 = vector.broadcast %8 : vector<32x1xf32> to vector<32x512xf32>
    %10 = arith.mulf %7, %9 : vector<32x512xf32>
    %cst_8 = arith.constant dense<0.000000e+00> : vector<512xf32>
    %11 = vector.multi_reduction <add>, %10, %cst_8 [0] : vector<32x512xf32> to vector<512xf32>
    %12 = vector.shape_cast %11 : vector<512xf32> to vector<1x512xf32>
    %c0_9 = arith.constant 0 : index
    %13 = memref.load %arg5[%c0_9] : memref<1xf32, #tpu.memory_space<smem>>
    %14 = vector.broadcast %13 : f32 to vector<1x512xf32>
    %15 = arith.addf %12, %14 : vector<1x512xf32>
    %cst_10 = arith.constant 0.000000e+00 : f32
    %16 = vector.broadcast %cst_10 : f32 to vector<1x512xf32>
    %17 = arith.subf %16, %15 : vector<1x512xf32>
    %18 = math.exp %17 : vector<1x512xf32>
    %cst_11 = arith.constant 1.000000e+00 : f32
    %19 = vector.broadcast %cst_11 : f32 to vector<1x512xf32>
    %20 = arith.addf %19, %18 : vector<1x512xf32>
    %cst_12 = arith.constant 1.000000e+00 : f32
    %21 = vector.broadcast %cst_12 : f32 to vector<1x512xf32>
    %22 = arith.divf %21, %20 : vector<1x512xf32>
    %c0_13 = arith.constant 0 : index
    %c0_14 = arith.constant 0 : index
    %23 = vector.load %arg6[%c0_13, %c0_14] : memref<1x512xf32, #tpu.memory_space<vmem>>, vector<1x512xf32>
    tpu.vector_store %arg6[%c0_13, %c0_14], %22 {strides = array<i32>} : memref<1x512xf32, #tpu.memory_space<vmem>>, vector<1x512xf32>,
    return
  }
  func.func @transform_0(%arg0: i32) -> (i32, i32) {
    %c0_i32 = arith.constant 0 : i32
    %c0_i32_0 = arith.constant 0 : i32
    return %arg0, %c0_i32 : i32, i32
  }
  func.func @transform_1(%arg0: i32) -> (i32, i32) {
    %c0_i32 = arith.constant 0 : i32
    %c0_i32_0 = arith.constant 0 : i32
    %c0_i32_1 = arith.constant 0 : i32
    return %c0_i32, %c0_i32_0 : i32, i32
  }
  func.func @transform_2(%arg0: i32) -> (i32, i32) {
    %c0_i32 = arith.constant 0 : i32
    %c0_i32_0 = arith.constant 0 : i32
    %c0_i32_1 = arith.constant 0 : i32
    return %c0_i32, %c0_i32_0 : i32, i32
  }
  func.func @transform_3(%arg0: i32) -> (i32, i32) {
    %c0_i32 = arith.constant 0 : i32
    %c0_i32_0 = arith.constant 0 : i32
    %c0_i32_1 = arith.constant 0 : i32
    return %c0_i32, %c0_i32_0 : i32, i32
  }
  func.func @transform_4(%arg0: i32) -> i32 {
    %c0_i32 = arith.constant 0 : i32
    %c0_i32_0 = arith.constant 0 : i32
    return %c0_i32 : i32
  }
  func.func @transform_5(%arg0: i32) -> (i32, i32) {
    %c0_i32 = arith.constant 0 : i32
    %c0_i32_0 = arith.constant 0 : i32
    return %c0_i32, %arg0 : i32, i32
  }
}

</mosaic_0001>

<bundles_post_ra>
// kernel: tpu_custom_call.1
= control target key start
LH: loop header
LB: loop body
LE: loop exit
PB: predicated region body
PF: predicated region fallthrough
CT: control target
= control target key end

     0   :  { %vm114_vm0 = vcmask 523264   ;;  %v862_v10 = vmov 0   ;;  %s1215_s0 = inlined_call_operand.vmem [shape: f32[512,64], index: 0, kind: input, shape index: {}]   ;;  %s1216_s1 = inlined_call_operand.vmem [shape: f32[32,64], index: 1, kind: input, shape index: {}]   ;;  %s1217_s2 = inlined_call_operand.vmem [shape: f32[32,1], index: 2, kind: input, shape index: {}]   ;;  %s1218_s3 = inlined_call_operand.vmem [shape: f32[32,1], index: 3, kind: input, shape index: {}]   ;;  %s1219_s4 = inlined_call_operand.<no memory space> [shape: f32[1], index: 4, kind: input, shape index: {}]   ;;  %s1220_s5 = inlined_call_operand.hbm [shape: f32[1,512], index: 5, kind: output, shape index: {}]  }
   0x1   :  { %v57_v0 = vld [vmem:[%s1215_s0 + $0xf8] sm:$0xff]  ;;  %v56_v4 = vld [vmem:[%s1215_s0 + $0xf0] sm:$0xff]  ;;  %v55_v8 = vld [vmem:[%s1215_s0 + $0xe8] sm:$0xff]  ;;  %822 = vset.pattern.permute.xlu0 %v862_v10  ;;  %823 = vset.pattern.permute.xlu1 %v862_v10 }
   0x2   :  { %v89_v1 = vld [vmem:[%s1215_s0 + $0x1f8] sm:$0xff]  ;;  %739 = vmatprep.subr.msk.mxu0 %vm114_vm0, %v57_v0  ;;  %v88_v5 = vld [vmem:[%s1215_s0 + $0x1f0] sm:$0xff]  ;;  %v87_v9 = vld [vmem:[%s1215_s0 + $0x1e8] sm:$0xff] }
   0x3   :  { %v41_v2 = vld [vmem:[%s1215_s0 + $0x78] sm:$0xff]  ;;  %779 = vmatprep.subr.msk.mxu1 %vm114_vm0, %v89_v1  ;;  %v40_v6 = vld [vmem:[%s1215_s0 + $0x70] sm:$0xff]  ;;  %v39_v11 = vld [vmem:[%s1215_s0 + $0x68] sm:$0xff] }
   0x4   :  { %v73_v3 = vld [vmem:[%s1215_s0 + $0x178] sm:$0xff]  ;;  %740 = vmatpush3.xpose.msk.msra.mxu0 %vm114_vm0, %v41_v2  ;;  %v72_v7 = vld [vmem:[%s1215_s0 + $0x170] sm:$0xff]  ;;  %v71_v12 = vld [vmem:[%s1215_s0 + $0x168] sm:$0xff] }
   0x5   :  { %780 = vmatpush3.xpose.msk.msra.mxu1 %vm114_vm0, %v73_v3  ;;  %741 = vmatprep.subr.msk.mxu0 %vm114_vm0, %v56_v4  ;;  %v54_v13 = vld [vmem:[%s1215_s0 + $0xe0] sm:$0xff]  ;;  %v53_v17 = vld [vmem:[%s1215_s0 + $0xd8] sm:$0xff]  ;;  %v52_v21 = vld [vmem:[%s1215_s0 + $0xd0] sm:$0xff] }
   0x6   :  { %781 = vmatprep.subr.msk.mxu1 %vm114_vm0, %v88_v5  ;;  %v86_v14 = vld [vmem:[%s1215_s0 + $0x1e0] sm:$0xff]  ;;  %v85_v18 = vld [vmem:[%s1215_s0 + $0x1d8] sm:$0xff]  ;;  %v84_v22 = vld [vmem:[%s1215_s0 + $0x1d0] sm:$0xff] }
   0x7   :  { %v38_v15 = vld [vmem:[%s1215_s0 + $0x60] sm:$0xff]  ;;  %v37_v19 = vld [vmem:[%s1215_s0 + $0x58] sm:$0xff]  ;;  %v36_v23 = vld [vmem:[%s1215_s0 + $0x50] sm:$0xff] }
   0x8   :  { %742 = vmatpush3.xpose.msk.msra.mxu0 %vm114_vm0, %v40_v6  ;;  %v70_v16 = vld [vmem:[%s1215_s0 + $0x160] sm:$0xff]  ;;  %v69_v20 = vld [vmem:[%s1215_s0 + $0x158] sm:$0xff]  ;;  %v68_v24 = vld [vmem:[%s1215_s0 + $0x150] sm:$0xff] }
   0x9   :  { %782 = vmatpush3.xpose.msk.msra.mxu1 %vm114_vm0, %v72_v7  ;;  %743 = vmatprep.subr.msk.mxu0 %vm114_vm0, %v55_v8  ;;  %v51_v25 = vld [vmem:[%s1215_s0 + $0xc8] sm:$0xff]  ;;  %v998_v27 = vld [vmem:[%s1216_s1] sm:$0xff]  ;;  %v92_v31 = vld [vmem:[%s1217_s2 + $0x10] sm:$0xff] }
   0xa   :  { %783 = vmatprep.subr.msk.mxu1 %vm114_vm0, %v87_v9  ;;  %v83_v26 = vld [vmem:[%s1215_s0 + $0x1c8] sm:$0xff]  ;;  %v90_v28 = vld [vmem:[%s1217_s2] sm:$0xff]  ;;  %771 = vmatprep.mubr.msk.f32.mxu0 %vm114_vm0, %v998_v27 }
   0xb   :  { %v35_v29 = vld [vmem:[%s1215_s0 + $0x48] sm:$0xff]  ;;  %v50_v32 = vld [vmem:[%s1215_s0 + $0xc0] sm:$0xff]  ;;  %811 = vmatprep.mubr.msk.f32.mxu1 %vm114_vm0, %v998_v27  ;;  %96 = vperm.xlu0 %822, %v90_v28  }
   0xc   :  { %744 = vmatpush3.xpose.msk.msra.mxu0 %vm114_vm0, %v39_v11  ;;  %v67_v30 = vld [vmem:[%s1215_s0 + $0x148] sm:$0xff]  ;;  %v82_v33 = vld [vmem:[%s1215_s0 + $0x1c0] sm:$0xff]  ;;  %106 = vperm.xlu1 %823, %v92_v31  }
   0xd   :  { %784 = vmatpush3.xpose.msk.msra.mxu1 %vm114_vm0, %v71_v12  ;;  %745 = vmatprep.subr.msk.mxu0 %vm114_vm0, %v54_v13 }
   0xe   :  { %785 = vmatprep.subr.msk.mxu1 %vm114_vm0, %v86_v14 }
  0x10   :  { %746 = vmatpush3.xpose.msk.msra.mxu0 %vm114_vm0, %v38_v15 }
  0x11   :  { %786 = vmatpush3.xpose.msk.msra.mxu1 %vm114_vm0, %v70_v16  ;;  %747 = vmatprep.subr.msk.mxu0 %vm114_vm0, %v53_v17 }
  0x12   :  { %787 = vmatprep.subr.msk.mxu1 %vm114_vm0, %v85_v18 }
  0x14   :  { %748 = vmatpush3.xpose.msk.msra.mxu0 %vm114_vm0, %v37_v19 }
  0x15   :  { %788 = vmatpush3.xpose.msk.msra.mxu1 %vm114_vm0, %v69_v20  ;;  %749 = vmatprep.subr.msk.mxu0 %vm114_vm0, %v52_v21 }
  0x16   :  { %789 = vmatprep.subr.msk.mxu1 %vm114_vm0, %v84_v22 }
  0x18   :  { %750 = vmatpush3.xpose.msk.msra.mxu0 %vm114_vm0, %v36_v23 }
  0x19   :  { %790 = vmatpush3.xpose.msk.msra.mxu1 %vm114_vm0, %v68_v24  ;;  %751 = vmatprep.subr.msk.mxu0 %vm114_vm0, %v51_v25 }
  0x1a   :  { %791 = vmatprep.subr.msk.mxu1 %vm114_vm0, %v83_v26 }
  0x1b   :  { %11 = vsyncpa [#allocation4], 0  ;;  %v91_v34 = vld [vmem:[%s1217_s2 + $0x8] sm:$0xff]  ;;  %v93_v35 = vld [vmem:[%s1217_s2 + $0x18] sm:$0xff] }
  0x1c   :  { %752 = vmatpush3.xpose.msk.msra.mxu0 %vm114_vm0, %v35_v29  ;;  %v34_v36 = vld [vmem:[%s1215_s0 + $0x40] sm:$0xff]  ;;  %v49_v38 = vld [vmem:[%s1215_s0 + $0xb8] sm:$0xff]  ;;  %101 = vperm.xlu0 %822, %v91_v34   ;;  %v514_v41 = vld [vmem:[%s1218_s3 + $0x8] sm:$0xff] }
  0x1d   :  { %792 = vmatpush3.xpose.msk.msra.mxu1 %vm114_vm0, %v67_v30  ;;  %753 = vmatprep.subr.msk.mxu0 %vm114_vm0, %v50_v32  ;;  %v66_v37 = vld [vmem:[%s1215_s0 + $0x140] sm:$0xff]  ;;  %v81_v39 = vld [vmem:[%s1215_s0 + $0x1b8] sm:$0xff]  ;;  %v48_v44 = vld [vmem:[%s1215_s0 + $0xb0] sm:$0xff] }
  0x1e   :  { %793 = vmatprep.subr.msk.mxu1 %vm114_vm0, %v82_v33  ;;  %111 = vperm.xlu1 %823, %v93_v35   ;;  %v513_v40 = vld [vmem:[%s1218_s3] sm:$0xff]  ;;  %v33_v42 = vld [vmem:[%s1215_s0 + $0x38] sm:$0xff]  ;;  %v80_v45 = vld [vmem:[%s1215_s0 + $0x1b0] sm:$0xff] }
  0x1f   :  { %v65_v43 = vld [vmem:[%s1215_s0 + $0x138] sm:$0xff]  ;;  %v515_v46 = vld [vmem:[%s1218_s3 + $0x10] sm:$0xff]  ;;  %v47_v50 = vld [vmem:[%s1215_s0 + $0xa8] sm:$0xff] }
  0x20   :  { %754 = vmatpush3.xpose.msk.msra.mxu0 %vm114_vm0, %v34_v36  ;;  %519 = vperm.xlu0 %822, %v513_v40   ;;  %v516_v47 = vld [vmem:[%s1218_s3 + $0x18] sm:$0xff]  ;;  %v32_v48 = vld [vmem:[%s1215_s0 + $0x30] sm:$0xff]  ;;  %v79_v51 = vld [vmem:[%s1215_s0 + $0x1a8] sm:$0xff] }
  0x21   :  { %794 = vmatpush3.xpose.msk.msra.mxu1 %vm114_vm0, %v66_v37  ;;  %755 = vmatprep.subr.msk.mxu0 %vm114_vm0, %v49_v38  ;;  %v64_v49 = vld [vmem:[%s1215_s0 + $0x130] sm:$0xff]  ;;  %v31_v52 = vld [vmem:[%s1215_s0 + $0x28] sm:$0xff]  ;;  %v46_v54 = vld [vmem:[%s1215_s0 + $0xa0] sm:$0xff] }
  0x22   :  { %795 = vmatprep.subr.msk.mxu1 %vm114_vm0, %v81_v39  ;;  %524 = vperm.xlu1 %823, %v514_v41   ;;  %v63_v53 = vld [vmem:[%s1215_s0 + $0x128] sm:$0xff]  ;;  %v78_v55 = vld [vmem:[%s1215_s0 + $0x1a0] sm:$0xff]  ;;  %v45_v58 = vld [vmem:[%s1215_s0 + $0x98] sm:$0xff] }
  0x23   :  { %v30_v56 = vld [vmem:[%s1215_s0 + $0x20] sm:$0xff]  ;;  %v77_v59 = vld [vmem:[%s1215_s0 + $0x198] sm:$0xff]  ;;  %v44_v62 = vld [vmem:[%s1215_s0 + $0x90] sm:$0xff] }
  0x24   :  { %756 = vmatpush3.xpose.msk.msra.mxu0 %vm114_vm0, %v33_v42  ;;  %529 = vperm.xlu0 %822, %v515_v46   ;;  %v62_v57 = vld [vmem:[%s1215_s0 + $0x120] sm:$0xff]  ;;  %v29_v60 = vld [vmem:[%s1215_s0 + $0x18] sm:$0xff]  ;;  %v76_v63 = vld [vmem:[%s1215_s0 + $0x190] sm:$0xff] }
  0x25   :  { %796 = vmatpush3.xpose.msk.msra.mxu1 %vm114_vm0, %v65_v43  ;;  %757 = vmatprep.subr.msk.mxu0 %vm114_vm0, %v48_v44  ;;  %v61_v61 = vld [vmem:[%s1215_s0 + $0x118] sm:$0xff]  ;;  %v28_v0 = vld [vmem:[%s1215_s0 + $0x10] sm:$0xff]  ;;  %v43_v2 = vld [vmem:[%s1215_s0 + $0x88] sm:$0xff] }
  0x26   :  { %797 = vmatprep.subr.msk.mxu1 %vm114_vm0, %v80_v45  ;;  %534 = vperm.xlu1 %823, %v516_v47   ;;  %v60_v1 = vld [vmem:[%s1215_s0 + $0x110] sm:$0xff]  ;;  %v75_v3 = vld [vmem:[%s1215_s0 + $0x188] sm:$0xff]  ;;  %v42_v6 = vld [vmem:[%s1215_s0 + $0x80] sm:$0xff] }
  0x27   :  { %v27_v4 = vld [vmem:[%s1215_s0 + $0x8] sm:$0xff]  ;;  %v74_v7 = vld [vmem:[%s1215_s0 + $0x180] sm:$0xff]  ;;  %v24_v11 = vld [vmem:[%s1216_s1 + $0x10] sm:$0xff] }
  0x28   :  { %758 = vmatpush3.xpose.msk.msra.mxu0 %vm114_vm0, %v32_v48  ;;  %v59_v5 = vld [vmem:[%s1215_s0 + $0x108] sm:$0xff]  ;;  %v26_v8 = vld [vmem:[%s1215_s0] sm:$0xff]  ;;  %v25_v12 = vld [vmem:[%s1216_s1 + $0x18] sm:$0xff] }
  0x29   :  { %798 = vmatpush3.xpose.msk.msra.mxu1 %vm114_vm0, %v64_v49  ;;  %759 = vmatprep.subr.msk.mxu0 %vm114_vm0, %v47_v50  ;;  %v58_v9 = vld [vmem:[%s1215_s0 + $0x100] sm:$0xff]  ;;  %v23_v10 = vld [vmem:[%s1216_s1 + $0x8] sm:$0xff] }
  0x2a   :  { %799 = vmatprep.subr.msk.mxu1 %vm114_vm0, %v79_v51 }
  0x2c   :  { %760 = vmatpush3.xpose.msk.msra.mxu0 %vm114_vm0, %v31_v52 }
  0x2d   :  { %800 = vmatpush3.xpose.msk.msra.mxu1 %vm114_vm0, %v63_v53  ;;  %761 = vmatprep.subr.msk.mxu0 %vm114_vm0, %v46_v54 }
  0x2e   :  { %801 = vmatprep.subr.msk.mxu1 %vm114_vm0, %v78_v55 }
  0x30   :  { %762 = vmatpush3.xpose.msk.msra.mxu0 %vm114_vm0, %v30_v56 }
  0x31   :  { %802 = vmatpush3.xpose.msk.msra.mxu1 %vm114_vm0, %v62_v57  ;;  %763 = vmatprep.subr.msk.mxu0 %vm114_vm0, %v45_v58 }
  0x32   :  { %803 = vmatprep.subr.msk.mxu1 %vm114_vm0, %v77_v59 }
  0x34   :  { %764 = vmatpush3.xpose.msk.msra.mxu0 %vm114_vm0, %v29_v60 }
  0x35   :  { %804 = vmatpush3.xpose.msk.msra.mxu1 %vm114_vm0, %v61_v61  ;;  %765 = vmatprep.subr.msk.mxu0 %vm114_vm0, %v44_v62 }
  0x36   :  { %805 = vmatprep.subr.msk.mxu1 %vm114_vm0, %v76_v63 }
  0x38   :  { %766 = vmatpush3.xpose.msk.msra.mxu0 %vm114_vm0, %v28_v0 }
  0x39   :  { %806 = vmatpush3.xpose.msk.msra.mxu1 %vm114_vm0, %v60_v1  ;;  %767 = vmatprep.subr.msk.mxu0 %vm114_vm0, %v43_v2 }
  0x3a   :  { %807 = vmatprep.subr.msk.mxu1 %vm114_vm0, %v75_v3 }
  0x3c   :  { %768 = vmatpush3.xpose.msk.msra.mxu0 %vm114_vm0, %v27_v4 }
  0x3d   :  { %808 = vmatpush3.xpose.msk.msra.mxu1 %vm114_vm0, %v59_v5  ;;  %769 = vmatprep.subr.msk.mxu0 %vm114_vm0, %v42_v6 }
  0x3e   :  { %809 = vmatprep.subr.msk.mxu1 %vm114_vm0, %v74_v7 }
  0x40   :  { %770 = vmatpush3.xpose.msk.msra.mxu0 %vm114_vm0, %v26_v8 }
  0x41   :  { %810 = vmatpush3.xpose.msk.msra.mxu1 %vm114_vm0, %v58_v9 }
  0x43   :  { %772 = vmatmul.mubr.msk.f32.vlgmr.msra.gmra.mxu0 %vm114_vm0, %v998_v27 }
  0x44   :  { %812 = vmatmul.mubr.msk.f32.vlgmr.msra.gmra.mxu1 %vm114_vm0, %v998_v27  ;;  %773 = vmatprep.mubr.msk.f32.mxu0 %vm114_vm0, %v23_v10 }
  0x45   :  { %813 = vmatprep.mubr.msk.f32.mxu1 %vm114_vm0, %v23_v10 }
  0x47   :  { %774 = vmatmul.mubr.msk.f32.gmra.mxu0 %vm114_vm0, %v23_v10 }
  0x48   :  { %814 = vmatmul.mubr.msk.f32.gmra.mxu1 %vm114_vm0, %v23_v10  ;;  %775 = vmatprep.mubr.msk.f32.mxu0 %vm114_vm0, %v24_v11 }
  0x49   :  { %815 = vmatprep.mubr.msk.f32.mxu1 %vm114_vm0, %v24_v11 }
  0x4b   :  { %776 = vmatmul.mubr.msk.f32.gmra.mxu0 %vm114_vm0, %v24_v11 }
  0x4c   :  { %816 = vmatmul.mubr.msk.f32.gmra.mxu1 %vm114_vm0, %v24_v11  ;;  %777 = vmatprep.mubr.msk.f32.mxu0 %vm114_vm0, %v25_v12 }
  0x4d   :  { %817 = vmatprep.mubr.msk.f32.mxu1 %vm114_vm0, %v25_v12 }
  0x4f   :  { %778 = vmatmul.mubr.msk.f32.gmra.mxu0 %vm114_vm0, %v25_v12 }
  0x50   :  { %818 = vmatmul.mubr.msk.f32.gmra.mxu1 %vm114_vm0, %v25_v12 }
  0x86   :  { %v97_v13 = vpop.permute.xlu0 %96 }
  0x87   :  { %v107_v14 = vpop.permute.xlu1 %106 }
  0x97   :  { %v102_v15 = vpop.permute.xlu0 %101 }
  0x99   :  { %v112_v22 = vpop.permute.xlu1 %111 }
  0x9b   :  { %v520_v27 = vpop.permute.xlu0 %519 }
  0x9d   :  { %v525_v42 = vpop.permute.xlu1 %524 }
  0x9f   :  { %v530_v51 = vpop.permute.xlu0 %529 }
 0x103   :  { %v385_v16 = vpop.f32.mrf.mxu0 }
 0x104   :  { %v474_v17 = vpop.f32.mrf.mxu1  ;;  %v386_v18 = vadd.f32 %v385_v16, %v97_v13  ;;  %v535_v16 = vpop.permute.xlu1 %534 }
 0x105   :  { %v475_v19 = vadd.f32 %v474_v17, %v97_v13  ;;  %v387_v20 = vpop.f32.mrf.mxu0 }
 0x106   :  { %v476_v21 = vpop.f32.mrf.mxu1  ;;  %v388_v23 = vadd.f32 %v387_v20, %v97_v13  ;;  %v497_v28 = vmax.f32 %v386_v18, 0.0 }
 0x107   :  { %v477_v24 = vadd.f32 %v476_v21, %v97_v13  ;;  %v391_v25 = vpop.f32.mrf.mxu0  ;;  %v499_v29 = vmax.f32 %v475_v19, 0.0 }
 0x108   :  { %v480_v26 = vpop.f32.mrf.mxu1  ;;  %v392_v30 = vadd.f32 %v391_v25, %v102_v15  ;;  %v498_v36 = vmax.f32 %v388_v23, 0.0  ;;  %v537_v47 = vmul.f32 %v520_v27, %v497_v28 }
 0x109   :  { %v481_v31 = vadd.f32 %v480_v26, %v102_v15  ;;  %v393_v32 = vpop.f32.mrf.mxu0  ;;  %v500_v37 = vmax.f32 %v477_v24, 0.0  ;;  %v539_v48 = vmul.f32 %v520_v27, %v499_v29 }
 0x10a   :  { %v482_v33 = vpop.f32.mrf.mxu1  ;;  %v394_v34 = vadd.f32 %v393_v32, %v102_v15  ;;  %v501_v38 = vmax.f32 %v392_v30, 0.0  ;;  %v538_v56 = vmul.f32 %v520_v27, %v498_v36 }
 0x10b   :  { %v483_v35 = vadd.f32 %v482_v33, %v102_v15  ;;  %v503_v39 = vmax.f32 %v481_v31, 0.0  ;;  %v397_v40 = vpop.f32.mrf.mxu0  ;;  %v540_v57 = vmul.f32 %v520_v27, %v500_v37 }
 0x10c   :  { %v486_v41 = vpop.f32.mrf.mxu1  ;;  %v502_v43 = vmax.f32 %v394_v34, 0.0  ;;  %v398_v45 = vadd.f32 %v397_v40, %v107_v14  ;;  %v541_v52 = vmul.f32 %v525_v42, %v501_v38 }
 0x10d   :  { %v504_v44 = vmax.f32 %v483_v35, 0.0  ;;  %v487_v46 = vadd.f32 %v486_v41, %v107_v14  ;;  %v399_v49 = vpop.f32.mrf.mxu0  ;;  %v543_v53 = vmul.f32 %v525_v42, %v503_v39 }
 0x10e   :  { %v488_v50 = vpop.f32.mrf.mxu1  ;;  %v505_v54 = vmax.f32 %v398_v45, 0.0  ;;  %v400_v58 = vadd.f32 %v399_v49, %v107_v14  ;;  %v542_v62 = vmul.f32 %v525_v42, %v502_v43  ;;  %v553_v8 = vadd.f32 %v541_v52, %v537_v47 }
 0x10f   :  { %v507_v55 = vmax.f32 %v487_v46, 0.0  ;;  %v489_v59 = vadd.f32 %v488_v50, %v107_v14  ;;  %v403_v60 = vpop.f32.mrf.mxu0  ;;  %v544_v63 = vmul.f32 %v525_v42, %v504_v44  ;;  %v571_v9 = vadd.f32 %v543_v53, %v539_v48 }
 0x110   :  { %v492_v61 = vpop.f32.mrf.mxu1  ;;  %v545_v0 = vmul.f32 %v530_v51, %v505_v54  ;;  %v506_v2 = vmax.f32 %v400_v58, 0.0  ;;  %v404_v4 = vadd.f32 %v403_v60, %v112_v22  ;;  %v562_v17 = vadd.f32 %v542_v62, %v538_v56 }
 0x111   :  { %v547_v1 = vmul.f32 %v530_v51, %v507_v55  ;;  %v508_v3 = vmax.f32 %v489_v59, 0.0  ;;  %v493_v5 = vadd.f32 %v492_v61, %v112_v22  ;;  %v405_v6 = vpop.f32.mrf.mxu0  ;;  %v580_v18 = vadd.f32 %v544_v63, %v540_v57 }
 0x112   :  { %v494_v7 = vpop.f32.mrf.mxu1  ;;  %v406_v10 = vadd.f32 %v405_v6, %v112_v22  ;;  %v546_v12 = vmul.f32 %v530_v51, %v506_v2  ;;  %v509_v15 = vmax.f32 %v404_v4, 0.0  ;;  %v554_v21 = vadd.f32 %v553_v8, %v545_v0 }
 0x113   :  { %v495_v11 = vadd.f32 %v494_v7, %v112_v22  ;;  %v548_v13 = vmul.f32 %v530_v51, %v508_v3  ;;  %v511_v14 = vmax.f32 %v493_v5, 0.0  ;;  %v572_v23 = vadd.f32 %v571_v9, %v547_v1 }
 0x114   :  { %v510_v19 = vmax.f32 %v406_v10, 0.0  ;;  %v549_v24 = vmul.f32 %v535_v16, %v509_v15  ;;  %v563_v26 = vadd.f32 %v562_v17, %v546_v12  ;;  %v590_v51 = vstv %s1219_s4  ;;  %s864_s4 = smov [#allocation3]  }
 0x115   :  { %v512_v20 = vmax.f32 %v495_v11, 0.0  ;;  %v551_v25 = vmul.f32 %v535_v16, %v511_v14  ;;  %v581_v27 = vadd.f32 %v580_v18, %v548_v13  ;;  %v863_v15 = vmov 1966171168   ;;  %s659_s15 = sshll.u32 %s864_s4, 4  ;;  %s660_s15 = int_to_ptr.vmem [resolvable:$true] %s659_s15 }
 0x116   :  { %v550_v28 = vmul.f32 %v535_v16, %v510_v19  ;;  %v555_v30 = vadd.f32 %v554_v21, %v549_v24  ;;  %v626_v14 = vunpack.c.l.s4 %v863_v15  ;;  %s840_s16 = scalar_lea.vmem %s660_s15, 64  ;;  %p845_p1 = scmp.lt.s32.totalorder %s660_s15, %s660_s15 }
 0x117   :  { %v552_v29 = vmul.f32 %v535_v16, %v512_v20  ;;  %v573_v31 = vadd.f32 %v572_v23, %v551_v25  ;;  %v628_v16 = vlaneseq  ;;  %p841_p0 = scmp.ne.s32.totalorder %s660_s15, %s840_s16  ;;  %p846_p2 = scmp.lt.s32.totalorder %s840_s16, %s840_s16 }
 0x118   :  { %v564_v22 = vadd.f32 %v563_v26, %v550_v28  ;;  %v556_v33 = vrot.slane %v555_v30, 4  ;;  %v627_v17 = vunpack.c.0.s8 %v626_v14 }
 0x119   :  { %v582_v32 = vadd.f32 %v581_v27, %v552_v29  ;;  %v574_v34 = vrot.slane %v573_v31, 4  ;;  %v629_v18 = vshrl.u32 %v628_v16, 7  ;;  %vm650_vm1 = vcmp.lt.s32.totalorder %v628_v16, 512  ;;  %p847_p3 = por %p846_p2, %p845_p1 }
 0x11a   :  { %v565_v35 = vrot.slane %v564_v22, 4  ;;  %v557_v37 = vadd.f32 %v556_v33, %v555_v30 }
 0x11b   :  { %v583_v36 = vrot.slane %v582_v32, 4  ;;  %v575_v38 = vadd.f32 %v574_v34, %v573_v31  ;;  %v630_v21 = vsub.s32 %v627_v17, %v629_v18  ;;  %p848_p4 = pnand %p847_p3, %p841_p0 }
 0x11c   :  { %v566_v39 = vadd.f32 %v565_v35, %v564_v22  ;;  %v558_v41 = vrot.slane %v557_v37, 2 }
 0x11d   :  { %v584_v40 = vadd.f32 %v583_v36, %v582_v32  ;;  %v576_v42 = vrot.slane %v575_v38, 2 }
 0x11e   :  { %v567_v43 = vrot.slane %v566_v39, 2  ;;  %v559_v45 = vadd.f32 %v558_v41, %v557_v37 }
 0x11f   :  { %v585_v44 = vrot.slane %v584_v40, 2  ;;  %v577_v46 = vadd.f32 %v576_v42, %v575_v38 }
 0x120   :  { %v568_v47 = vadd.f32 %v567_v43, %v566_v39  ;;  %v560_v49 = vrot.slane %v559_v45, 1 }
 0x121   :  { %v586_v48 = vadd.f32 %v585_v44, %v584_v40  ;;  %v578_v50 = vrot.slane %v577_v46, 1 }
 0x122   :  { %v569_v52 = vrot.slane %v568_v47, 1  ;;  %v561_v54 = vadd.f32 %v560_v49, %v559_v45 }
 0x123   :  { %v587_v53 = vrot.slane %v586_v48, 1  ;;  %v579_v55 = vadd.f32 %v578_v50, %v577_v46 }
 0x124   :  { %v570_v56 = vadd.f32 %v569_v52, %v568_v47  ;;  %v591_v58 = vadd.f32 %v590_v51, %v561_v54 }
 0x125   :  { %v588_v57 = vadd.f32 %v587_v53, %v586_v48  ;;  %v593_v59 = vadd.f32 %v590_v51, %v579_v55 }
 0x126   :  { %v592_v60 = vadd.f32 %v590_v51, %v570_v56  ;;  %v595_v62 = vsub.f32 0.0, %v591_v58 }
 0x127   :  { %v594_v61 = vadd.f32 %v590_v51, %v588_v57  ;;  %v597_v63 = vsub.f32 0.0, %v593_v59 }
 0x128   :  { %v596_v0 = vsub.f32 0.0, %v592_v60  ;;  %v599_v2 = vmul.f32 1.442695, %v595_v62 }
 0x129   :  { %v598_v1 = vsub.f32 0.0, %v594_v61  ;;  %v603_v3 = vmul.f32 1.442695, %v597_v63 }
 0x12a   :  { %v601_v4 = vmul.f32 1.442695, %v596_v0  ;;  %824 = vpow2.f32 %v599_v2 }
 0x12b   :  { %v605_v5 = vmul.f32 1.442695, %v598_v1  ;;  %826 = vpow2.f32 %v603_v3 }
 0x12c   :  { %828 = vpow2.f32 %v601_v4 }
 0x12d   :  { %830 = vpow2.f32 %v605_v5 }
 0x137   :  { %v825_v6 = vpop.eup %824 }
 0x138   :  { %v827_v7 = vpop.eup %826  ;;  %v607_v8 = vadd.f32 1.0, %v825_v6 }
 0x139   :  { %v829_v9 = vpop.eup %828  ;;  %v609_v10 = vadd.f32 1.0, %v827_v7 }
 0x13a   :  { %v831_v11 = vpop.eup %830  ;;  %832 = vrcp.f32 %v607_v8  ;;  %v608_v12 = vadd.f32 1.0, %v829_v9 }
 0x13b   :  { %834 = vrcp.f32 %v609_v10  ;;  %v610_v13 = vadd.f32 1.0, %v831_v11 }
 0x13c   :  { %836 = vrcp.f32 %v608_v12 }
 0x13d   :  { %838 = vrcp.f32 %v610_v13 }
 0x147   :  { %v833_v19 = vpop.eup %832 }
 0x148   :  { %v835_v20 = vpop.eup %834 }
 0x149   :  { %v837_v23 = vpop.eup %836 }
 0x14a   :  { %v839_v24 = vpop.eup %838  ;;  %v623_v25 = vcombine.low %v833_v19, %v837_v23 }
 0x14b   :  { %v624_v26 = vcombine.low %v835_v20, %v839_v24 }
 0x14c   :  { %v631_v27 = vrot.slane %v623_v25, %v630_v21 }
 0x14d   :  { %v638_v28 = vrot.slane %v624_v26, %v630_v21 }
 0x14f   :  { %v639_v29 = vcombine.low %v631_v27, %v638_v28 }
 0x151   :  { %v646_v30 = vrot.slane %v639_v29, %v630_v21 }
 0x153   :  { %652 = vst.msk [vmem:[#allocation3] sm:$0xf] %vm650_vm1, %v646_v30 }
 0x154   :  { %851 = shalt.err (!%p848_p4)
}
 0x155   :  { %662 = dma.vmem_to_hbm [thread:$0]  %s660_s15, 64, %s1220_s5, [#allocation4]  }
 0x156   :  { %860 = dma.done.wait [#allocation4], 64  }
 0x157   :  { %861 = vsyncadd [#allocation4], 4294967232 }
 0x158   :  { %666 = vsyncpa [#allocation4], 1 }

</bundles_post_ra>
